<compile_context>
chip_gen: v7x
topology: tpu7x:2x2x1
jax: 0.10.0
libtpu: 0.0.40
codegen_flags: <defaults>
</compile_context>

<pallas_src>
import jax
import jax.numpy as jnp
from jax.experimental import pallas as pl
from jax.experimental.pallas import tpu as pltpu

H1 = 128        # fc1 output width (already MXU-friendly)
H2 = 64         # fc2 logical output width
OUT = 8         # fc3 logical output width (Q-values)
H2_PAD = 128    # fc2 padded to full 128 lanes (zeros in the extra lanes)
H3_PAD = 128    # fc3 matmul kept 128-wide; live 8 lanes sliced before store


def qnet_kernel(x_ref, w1_ref, b1_ref, w2_ref, b2_ref, w3_ref, b3_ref,
                q_ref, act_ref):
    # In-kernel bf16 cast of the f32 input tile (free VPU work; keeps the
    # wrapper from doing a separate cast pass over the whole activation).
    x = x_ref[...].astype(jnp.bfloat16)

    # fc1 + ReLU   (bf16 matmul, f32 accumulate + f32 elementwise)
    h1 = jnp.dot(x, w1_ref[...], preferred_element_type=jnp.float32) + b1_ref[...]
    h1 = jnp.maximum(h1, 0.0).astype(jnp.bfloat16)

    # fc2 + ReLU  (padded to 128 output lanes; extra lanes are exactly zero)
    h2 = jnp.dot(h1, w2_ref[...], preferred_element_type=jnp.float32) + b2_ref[...]
    h2 = jnp.maximum(h2, 0.0).astype(jnp.bfloat16)

    # fc3 (no activation).  Matmul stays 128-wide (padded w3/b3 are zero in
    # the dead lanes); only the 8 live Q-value lanes are stored.
    h3 = jnp.dot(h2, w3_ref[...], preferred_element_type=jnp.float32) + b3_ref[...]
    q = h3[:, :OUT]                                   # [TB, 8] f32
    q_ref[...] = q

    # Fused greedy-action epilogue: index of the first maximal Q-value.
    m = jnp.max(q, axis=-1, keepdims=True)
    idx = jax.lax.broadcasted_iota(jnp.int32, q.shape, 1)
    act_ref[...] = jnp.min(jnp.where(q == m, idx, OUT), axis=-1, keepdims=True)


def _round_up(v, m):
    return (v + m - 1) // m * m


def _choose_tb(batch, tb_max):
    """Batch tile: multiple of 8; >= ~4 grid steps when the batch allows it."""
    b8 = _round_up(batch, 8)
    tb = min(tb_max, b8)
    if b8 >= 32:
        # Cap so the grid has at least ~4 steps (v7x 2-TC sharding + DMA/compute
        # overlap).  No-op for tiny batches or when tb_max already limits us.
        tb = min(tb, max(8, (b8 // 4) // 8 * 8))
    return tb


def pack_params(params):
    """Pad fc2/fc3 to 128 lanes (zeros) and cast weights to bf16."""
    w1, b1, w2, b2, w3, b3 = params
    w2p = jnp.zeros((H1, H2_PAD), jnp.float32).at[:, :H2].set(w2)
    b2p = jnp.zeros((1, H2_PAD), jnp.float32).at[:, :H2].set(b2)
    w3p = jnp.zeros((H2_PAD, H3_PAD), jnp.float32).at[:H2, :OUT].set(w3)
    b3p = jnp.zeros((1, H3_PAD), jnp.float32).at[:, :OUT].set(b3)
    return (w1.astype(jnp.bfloat16), b1,
            w2p.astype(jnp.bfloat16), b2p,
            w3p.astype(jnp.bfloat16), b3p)


def qnet_forward(x, packed_params, *, tb=1024):
    """x: [B, input_dim] f32.  Returns (q_values [B, 8] f32, actions [B] int32)."""
    w1, b1, w2, b2, w3, b3 = packed_params
    B, K = x.shape

    TB = _choose_tb(B, tb)
    B_pad = _round_up(B, TB)
    if B_pad != B:
        # Only pad the ragged tail (rows are independent; padded rows are
        # sliced off below and never participate in any cross-row reduction).
        x = jnp.pad(x, ((0, B_pad - B), (0, 0)))

    grid = (pl.cdiv(B_pad, TB),)
    const = lambda i: (0, 0)   # weights/biases stay resident across grid steps

    flops = 2 * B_pad * (K * H1 + H1 * H2_PAD + H2_PAD * H3_PAD)
    bytes_accessed = (
        B_pad * K * 4                               # f32 activations in
        + (w1.size + w2.size + w3.size) * 2         # bf16 weights (resident)
        + (b1.size + b2.size + b3.size) * 4         # f32 biases
        + B_pad * OUT * 4                           # f32 Q-values out
        + B_pad * 4                                 # int32 greedy actions out
    )

    q, act = pl.pallas_call(
        qnet_kernel,
        out_shape=(
            jax.ShapeDtypeStruct((B_pad, OUT), jnp.float32),
            jax.ShapeDtypeStruct((B_pad, 1), jnp.int32),
        ),
        grid=grid,
        in_specs=[
            pl.BlockSpec((TB, K), lambda i: (i, 0)),        # x: tiled over batch
            pl.BlockSpec((K, H1), const),                   # w1 (resident)
            pl.BlockSpec((1, H1), const),                   # b1
            pl.BlockSpec((H1, H2_PAD), const),              # w2
            pl.BlockSpec((1, H2_PAD), const),               # b2
            pl.BlockSpec((H2_PAD, H3_PAD), const),          # w3
            pl.BlockSpec((1, H3_PAD), const),               # b3
        ],
        out_specs=(
            pl.BlockSpec((TB, OUT), lambda i: (i, 0)),      # 8-lane Q output
            pl.BlockSpec((TB, 1), lambda i: (i, 0)),        # int32 action
        ),
        compiler_params=pltpu.CompilerParams(
            dimension_semantics=("parallel",),
        ),
        cost_estimate=pl.CostEstimate(
            flops=flops, transcendentals=0, bytes_accessed=bytes_accessed),
    )(x, w1, b1, w2, b2, w3, b3)

    return q[:B], act[:B, 0]


def init_params(key, input_dim):
    """Deterministic init mirroring PyTorch Linear default (uniform +/- 1/sqrt(fan_in))."""
    dims = [(input_dim, H1), (H1, H2), (H2, OUT)]
    params = []
    for fan_in, fan_out in dims:
        kw, kb, key = jax.random.split(key, 3)
        bound = 1.0 / jnp.sqrt(float(fan_in))
        w = jax.random.uniform(kw, (fan_in, fan_out), jnp.float32, -bound, bound)
        b = jax.random.uniform(kb, (1, fan_out), jnp.float32, -bound, bound)
        params += [w, b]
    return params


def qnet_reference(x, params):
    """Pure-JAX reference with the same bf16 matmul / f32 accumulate recipe."""
    w1, b1, w2, b2, w3, b3 = params
    xb = x.astype(jnp.bfloat16)
    h1 = jnp.dot(xb, w1.astype(jnp.bfloat16),
                 preferred_element_type=jnp.float32) + b1
    h1 = jnp.maximum(h1, 0.0).astype(jnp.bfloat16)
    h2 = jnp.dot(h1, w2.astype(jnp.bfloat16),
                 preferred_element_type=jnp.float32) + b2
    h2 = jnp.maximum(h2, 0.0).astype(jnp.bfloat16)
    return jnp.dot(h2, w3.astype(jnp.bfloat16),
                   preferred_element_type=jnp.float32) + b3


# TODO(synk): sample_action's epsilon-greedy coin flip is host-side Python RNG
# and stays outside the kernel; the greedy argmax branch is fused here as the
# second (int32) kernel output.

if __name__ == "__main__":
    B, input_dim = 8, 32
    key = jax.random.PRNGKey(0)
    kx, kp = jax.random.split(key)
    x = jax.random.normal(kx, (B, input_dim), jnp.float32)
    params = init_params(kp, input_dim)
    packed = pack_params(params)

    q, act = qnet_forward(x, packed)
    q = jax.block_until_ready(q)
    act = jax.block_until_ready(act)

    ref = qnet_reference(x, params)
    assert q.shape == (B, OUT)
    assert act.shape == (B,)
    assert jnp.allclose(q, ref, atol=1e-2, rtol=1e-2), float(jnp.max(jnp.abs(q - ref)))
    assert bool(jnp.all(act == jnp.argmax(q, axis=-1)))

    print("KERNEL_OK")
</pallas_src>

<mosaic_0001>
module attributes {stable_mosaic.version = 11 : i64} {
  func.func @qnet_kernel(%arg0: i32, %arg1: memref<8x32xf32, #tpu.memory_space<vmem>>, %arg2: memref<32x128xbf16, #tpu.memory_space<vmem>>, %arg3: memref<1x128xf32, #tpu.memory_space<vmem>>, %arg4: memref<128x128xbf16, #tpu.memory_space<vmem>>, %arg5: memref<1x128xf32, #tpu.memory_space<vmem>>, %arg6: memref<128x128xbf16, #tpu.memory_space<vmem>>, %arg7: memref<1x128xf32, #tpu.memory_space<vmem>>, %arg8: memref<8x8xf32, #tpu.memory_space<vmem>>, %arg9: memref<8x1xi32, #tpu.memory_space<vmem>>) attributes {dimension_semantics = [#tpu.dimension_semantics<parallel>], iteration_bounds = array<i64: 1>, scalar_prefetch = 0 : i64, scratch_operands = 0 : i64, tpu.core_type = #tpu.core_type<tc>, window_params = [{transform_indices = @transform_0, window_bounds = array<i64: 8, 32>}, {pipeline_mode = #tpu.pipeline_mode<synchronous>, transform_indices = @transform_1, window_bounds = array<i64: 32, 128>}, {pipeline_mode = #tpu.pipeline_mode<synchronous>, transform_indices = @transform_2, window_bounds = array<i64: 1, 128>}, {pipeline_mode = #tpu.pipeline_mode<synchronous>, transform_indices = @transform_3, window_bounds = array<i64: 128, 128>}, {pipeline_mode = #tpu.pipeline_mode<synchronous>, transform_indices = @transform_4, window_bounds = array<i64: 1, 128>}, {pipeline_mode = #tpu.pipeline_mode<synchronous>, transform_indices = @transform_5, window_bounds = array<i64: 128, 128>}, {pipeline_mode = #tpu.pipeline_mode<synchronous>, transform_indices = @transform_6, window_bounds = array<i64: 1, 128>}, {transform_indices = @transform_7, window_bounds = array<i64: 8, 8>}, {transform_indices = @transform_8, window_bounds = array<i64: 8, 1>}]} {
    %c0 = arith.constant 0 : index
    %c0_0 = arith.constant 0 : index
    %0 = vector.load %arg1[%c0, %c0_0] : memref<8x32xf32, #tpu.memory_space<vmem>>, vector<8x32xf32>
    %1 = arith.truncf %0 : vector<8x32xf32> to vector<8x32xbf16>
    %c0_1 = arith.constant 0 : index
    %c0_2 = arith.constant 0 : index
    %2 = vector.load %arg2[%c0_1, %c0_2] : memref<32x128xbf16, #tpu.memory_space<vmem>>, vector<32x128xbf16>
    %cst = arith.constant dense<0.000000e+00> : vector<8x128xf32>
    %3 = tpu.matmul %1, %2, %cst {dimension_numbers = #tpu.dot_dimension_numbers<[1], [0], [0], [1], [0, 0, 1, 1], [], []>} : vector<8x32xbf16>, vector<32x128xbf16>, vector<8x128xf32> -> vector<8x128xf32>
    %c0_3 = arith.constant 0 : index
    %c0_4 = arith.constant 0 : index
    %4 = vector.load %arg3[%c0_3, %c0_4] : memref<1x128xf32, #tpu.memory_space<vmem>>, vector<1x128xf32>
    %5 = vector.broadcast %4 : vector<1x128xf32> to vector<8x128xf32>
    %6 = arith.addf %3, %5 : vector<8x128xf32>
    %cst_5 = arith.constant 0.000000e+00 : f32
    %7 = vector.broadcast %cst_5 : f32 to vector<8x128xf32>
    %8 = arith.maximumf %6, %7 : vector<8x128xf32>
    %9 = arith.truncf %8 : vector<8x128xf32> to vector<8x128xbf16>
    %c0_6 = arith.constant 0 : index
    %c0_7 = arith.constant 0 : index
    %10 = vector.load %arg4[%c0_6, %c0_7] : memref<128x128xbf16, #tpu.memory_space<vmem>>, vector<128x128xbf16>
    %cst_8 = arith.constant dense<0.000000e+00> : vector<8x128xf32>
    %11 = tpu.matmul %9, %10, %cst_8 {dimension_numbers = #tpu.dot_dimension_numbers<[1], [0], [0], [1], [0, 0, 1, 1], [], []>} : vector<8x128xbf16>, vector<128x128xbf16>, vector<8x128xf32> -> vector<8x128xf32>
    %c0_9 = arith.constant 0 : index
    %c0_10 = arith.constant 0 : index
    %12 = vector.load %arg5[%c0_9, %c0_10] : memref<1x128xf32, #tpu.memory_space<vmem>>, vector<1x128xf32>
    %13 = vector.broadcast %12 : vector<1x128xf32> to vector<8x128xf32>
    %14 = arith.addf %11, %13 : vector<8x128xf32>
    %cst_11 = arith.constant 0.000000e+00 : f32
    %15 = vector.broadcast %cst_11 : f32 to vector<8x128xf32>
    %16 = arith.maximumf %14, %15 : vector<8x128xf32>
    %17 = arith.truncf %16 : vector<8x128xf32> to vector<8x128xbf16>
    %c0_12 = arith.constant 0 : index
    %c0_13 = arith.constant 0 : index
    %18 = vector.load %arg6[%c0_12, %c0_13] : memref<128x128xbf16, #tpu.memory_space<vmem>>, vector<128x128xbf16>
    %cst_14 = arith.constant dense<0.000000e+00> : vector<8x128xf32>
    %19 = tpu.matmul %17, %18, %cst_14 {dimension_numbers = #tpu.dot_dimension_numbers<[1], [0], [0], [1], [0, 0, 1, 1], [], []>} : vector<8x128xbf16>, vector<128x128xbf16>, vector<8x128xf32> -> vector<8x128xf32>
    %c0_15 = arith.constant 0 : index
    %c0_16 = arith.constant 0 : index
    %20 = vector.load %arg7[%c0_15, %c0_16] : memref<1x128xf32, #tpu.memory_space<vmem>>, vector<1x128xf32>
    %21 = vector.broadcast %20 : vector<1x128xf32> to vector<8x128xf32>
    %22 = arith.addf %19, %21 : vector<8x128xf32>
    %23 = vector.extract_strided_slice %22 {offsets = [0, 0], sizes = [8, 8], strides = [1, 1]} : vector<8x128xf32> to vector<8x8xf32>
    %c0_17 = arith.constant 0 : index
    %c0_18 = arith.constant 0 : index
    %24 = vector.load %arg8[%c0_17, %c0_18] : memref<8x8xf32, #tpu.memory_space<vmem>>, vector<8x8xf32>
    tpu.vector_store %arg8[%c0_17, %c0_18], %23 {strides = array<i32>} : memref<8x8xf32, #tpu.memory_space<vmem>>, vector<8x8xf32>,
    %cst_19 = arith.constant dense<0xFF800000> : vector<8xf32>
    %25 = vector.multi_reduction <maximumf>, %23, %cst_19 [1] : vector<8x8xf32> to vector<8xf32>
    %26 = vector.shape_cast %25 : vector<8xf32> to vector<8x1xf32>
    %27 = tpu.iota {dimensions = array<i32: 1>} : vector<8x8xi32>
    %28 = vector.broadcast %26 : vector<8x1xf32> to vector<8x8xf32>
    %29 = arith.cmpf oeq, %23, %28 : vector<8x8xf32>
    %c8_i32 = arith.constant 8 : i32
    %30 = vector.broadcast %c8_i32 : i32 to vector<8x8xi32>
    %31 = arith.select %29, %27, %30 : vector<8x8xi1>, vector<8x8xi32>
    %cst_20 = arith.constant dense<2147483647> : vector<8xi32>
    %32 = vector.multi_reduction <minsi>, %31, %cst_20 [1] : vector<8x8xi32> to vector<8xi32>
    %33 = vector.shape_cast %32 : vector<8xi32> to vector<8x1xi32>
    %c0_21 = arith.constant 0 : index
    %c0_22 = arith.constant 0 : index
    %34 = vector.load %arg9[%c0_21, %c0_22] : memref<8x1xi32, #tpu.memory_space<vmem>>, vector<8x1xi32>
    tpu.vector_store %arg9[%c0_21, %c0_22], %33 {strides = array<i32>} : memref<8x1xi32, #tpu.memory_space<vmem>>, vector<8x1xi32>,
    return
  }
  func.func @transform_0(%arg0: i32) -> (i32, i32) {
    %c0_i32 = arith.constant 0 : i32
    %c0_i32_0 = arith.constant 0 : i32
    return %arg0, %c0_i32 : i32, i32
  }
  func.func @transform_1(%arg0: i32) -> (i32, i32) {
    %c0_i32 = arith.constant 0 : i32
    %c0_i32_0 = arith.constant 0 : i32
    %c0_i32_1 = arith.constant 0 : i32
    return %c0_i32, %c0_i32_0 : i32, i32
  }
  func.func @transform_2(%arg0: i32) -> (i32, i32) {
    %c0_i32 = arith.constant 0 : i32
    %c0_i32_0 = arith.constant 0 : i32
    %c0_i32_1 = arith.constant 0 : i32
    return %c0_i32, %c0_i32_0 : i32, i32
  }
  func.func @transform_3(%arg0: i32) -> (i32, i32) {
    %c0_i32 = arith.constant 0 : i32
    %c0_i32_0 = arith.constant 0 : i32
    %c0_i32_1 = arith.constant 0 : i32
    return %c0_i32, %c0_i32_0 : i32, i32
  }
  func.func @transform_4(%arg0: i32) -> (i32, i32) {
    %c0_i32 = arith.constant 0 : i32
    %c0_i32_0 = arith.constant 0 : i32
    %c0_i32_1 = arith.constant 0 : i32
    return %c0_i32, %c0_i32_0 : i32, i32
  }
  func.func @transform_5(%arg0: i32) -> (i32, i32) {
    %c0_i32 = arith.constant 0 : i32
    %c0_i32_0 = arith.constant 0 : i32
    %c0_i32_1 = arith.constant 0 : i32
    return %c0_i32, %c0_i32_0 : i32, i32
  }
  func.func @transform_6(%arg0: i32) -> (i32, i32) {
    %c0_i32 = arith.constant 0 : i32
    %c0_i32_0 = arith.constant 0 : i32
    %c0_i32_1 = arith.constant 0 : i32
    return %c0_i32, %c0_i32_0 : i32, i32
  }
  func.func @transform_7(%arg0: i32) -> (i32, i32) {
    %c0_i32 = arith.constant 0 : i32
    %c0_i32_0 = arith.constant 0 : i32
    return %arg0, %c0_i32 : i32, i32
  }
  func.func @transform_8(%arg0: i32) -> (i32, i32) {
    %c0_i32 = arith.constant 0 : i32
    %c0_i32_0 = arith.constant 0 : i32
    return %arg0, %c0_i32 : i32, i32
  }
}

</mosaic_0001>

<bundles_post_ra>
// kernel: tpu_custom_call.1
= control target key start
LH: loop header
LB: loop body
LE: loop exit
PB: predicated region body
PF: predicated region fallthrough
CT: control target
= control target key end

     0   :  { %14 = vsyncpa [#allocation3], 0  ;;  %s820_s0 = inlined_call_operand.hbm [shape: f32[8,32], index: 0, kind: input, shape index: {}]   ;;  %s821_s1 = inlined_call_operand.hbm [shape: bf16[32,128], index: 1, kind: input, shape index: {}]   ;;  %s822_s2 = inlined_call_operand.vmem [shape: f32[1,128], index: 2, kind: input, shape index: {}]   ;;  %s823_s3 = inlined_call_operand.hbm [shape: bf16[128,128], index: 3, kind: input, shape index: {}]   ;;  %s824_s4 = inlined_call_operand.vmem [shape: f32[1,128], index: 4, kind: input, shape index: {}]   ;;  %s825_s5 = inlined_call_operand.hbm [shape: bf16[128,128], index: 5, kind: input, shape index: {}]   ;;  %s826_s6 = inlined_call_operand.vmem [shape: f32[1,128], index: 6, kind: input, shape index: {}]   ;;  %s827_s7 = inlined_call_operand.hbm [shape: f32[8,8], index: 7, kind: output, shape index: {0}]   ;;  %s828_s8 = inlined_call_operand.vmem [shape: s32[8,1], index: 8, kind: output, shape index: {1}]  }
   0x1   :  { %15 = vsyncpa [#allocation6], 0 }
   0x2   :  { %16 = vsyncpa [#allocation9], 0 }
   0x3   :  { %17 = vsyncpa [#allocation4], 0  ;;  %s661_s27 = smov [#allocation5]   ;;  %s543_s9 = scalar_lea.hbm %s821_s1, 256 }
   0x4   :  { %s33_s28 = sshll.u32 %s661_s27, 4  ;;  %p544_p0 = scmp.ne.s32.totalorder %s821_s1, %s543_s9  ;;  %s34_s28 = int_to_ptr.vmem [resolvable:$true] %s33_s28 }
   0x5   :  { %p547_p1 = scmp.lt.u32.totalorder %s543_s9, %s821_s1 }
   0x7   :  { %p549_p2 = pnand %p547_p1, %p544_p0 }
   0x9   :  { %552 = shalt.err (!%p549_p2)
}
   0xa   :  { %s553_s14 = scalar_lea.vmem %s34_s28, 256  ;;  %p558_p4 = scmp.lt.s32.totalorder %s34_s28, %s34_s28 }
   0xb   :  { %p554_p3 = scmp.ne.s32.totalorder %s34_s28, %s553_s14  ;;  %p559_p5 = scmp.lt.s32.totalorder %s553_s14, %s553_s14 }
   0xd   :  { %p560_p6 = por %p559_p5, %p558_p4 }
   0xf   :  { %p561_p7 = pnand %p560_p6, %p554_p3 }
  0x11   :  { %564 = shalt.err (!%p561_p7)
}
  0x12   :  { %s662_s15 = smov 64   ;;  %s663_s16 = smov 4  }
  0x13   :  { %39 = dma.hbm_to_vmem [thread:$0]  %s821_s1, 256, %s34_s28, [#allocation6], %s662_s15, %s662_s15, %s663_s16  }
  0x14   :  { %s664_s19 = smov [#allocation2]   ;;  %s665_s21 = smov [#allocation7]  }
  0x15   :  { %s24_s20 = sshll.u32 %s664_s19, 4  ;;  %s47_s22 = sshll.u32 %s665_s21, 4  ;;  %s25_s20 = int_to_ptr.vmem [resolvable:$true] %s24_s20  ;;  %s48_s22 = int_to_ptr.vmem [resolvable:$true] %s47_s22 }
  0x16   :  { %s565_s25 = scalar_lea.hbm %s820_s0, 128 }
  0x17   :  { %p566_p8 = scmp.ne.s32.totalorder %s820_s0, %s565_s25  ;;  %p569_p9 = scmp.lt.u32.totalorder %s565_s25, %s820_s0 }
  0x19   :  { %p571_p10 = pnand %p569_p9, %p566_p8 }
  0x1b   :  { %574 = shalt.err (!%p571_p10)
}
  0x1c   :  { %s575_s1 = scalar_lea.vmem %s25_s20, 128  ;;  %p580_p12 = scmp.lt.s32.totalorder %s25_s20, %s25_s20 }
  0x1d   :  { %p576_p11 = scmp.ne.s32.totalorder %s25_s20, %s575_s1  ;;  %p581_p13 = scmp.lt.s32.totalorder %s575_s1, %s575_s1 }
  0x1f   :  { %p582_p0 = por %p581_p13, %p580_p12 }
  0x21   :  { %p583_p1 = pnand %p582_p0, %p576_p11 }
  0x23   :  { %586 = shalt.err (!%p583_p1)
}
  0x24   :  { %27 = dma.hbm_to_vmem [thread:$0]  %s820_s0, 128, %s25_s20, [#allocation3]  }
  0x25   :  { %s587_s12 = scalar_lea.hbm %s823_s3, 1024 }
  0x26   :  { %p588_p2 = scmp.ne.s32.totalorder %s823_s3, %s587_s12  ;;  %p591_p3 = scmp.lt.u32.totalorder %s587_s12, %s823_s3 }
  0x28   :  { %p593_p4 = pnand %p591_p3, %p588_p2 }
  0x2a   :  { %596 = shalt.err (!%p593_p4)
}
  0x2b   :  { %s597_s19 = scalar_lea.vmem %s48_s22, 1024  ;;  %p602_p6 = scmp.lt.s32.totalorder %s48_s22, %s48_s22 }
  0x2c   :  { %p598_p5 = scmp.ne.s32.totalorder %s48_s22, %s597_s19  ;;  %p603_p7 = scmp.lt.s32.totalorder %s597_s19, %s597_s19 }
  0x2e   :  { %p604_p8 = por %p603_p7, %p602_p6 }
  0x30   :  { %p605_p9 = pnand %p604_p8, %p598_p5 }
  0x32   :  { %608 = shalt.err (!%p605_p9)
}
  0x33   :  { %53 = dma.hbm_to_vmem [thread:$0]  %s823_s3, 1024, %s48_s22, [#allocation6], %s662_s15, %s662_s15, %s663_s16  }
  0x34   :  { %s666_s21 = smov [#allocation8]   ;;  %s609_s26 = scalar_lea.hbm %s825_s5, 1024 }
  0x35   :  { %s61_s23 = sshll.u32 %s666_s21, 4  ;;  %p610_p10 = scmp.ne.s32.totalorder %s825_s5, %s609_s26  ;;  %s62_s23 = int_to_ptr.vmem [resolvable:$true] %s61_s23 }
  0x36   :  { %p613_p11 = scmp.lt.u32.totalorder %s609_s26, %s825_s5 }
  0x38   :  { %p615_p12 = pnand %p613_p11, %p610_p10 }
  0x3a   :  { %618 = shalt.err (!%p615_p12)
}
  0x3b   :  { %s619_s28 = scalar_lea.vmem %s62_s23, 1024  ;;  %p624_p0 = scmp.lt.s32.totalorder %s62_s23, %s62_s23 }
  0x3c   :  { %p620_p13 = scmp.ne.s32.totalorder %s62_s23, %s619_s28  ;;  %p625_p1 = scmp.lt.s32.totalorder %s619_s28, %s619_s28 }
  0x3e   :  { %p626_p2 = por %p625_p1, %p624_p0 }
  0x40   :  { %p627_p3 = pnand %p626_p2, %p620_p13 }
  0x42   :  { %630 = shalt.err (!%p627_p3)
}
  0x43   :  { %67 = dma.hbm_to_vmem [thread:$0]  %s825_s5, 1024, %s62_s23, [#allocation9], %s662_s15, %s662_s15, %s663_s16  }
  0x44   :  { %653 = dma.done.wait [#allocation3], 128  }
  0x45   :  { %654 = vsyncadd [#allocation3], 4294967168 }
  0x46   :  { %655 = dma.done.wait [#allocation6], 1280  }
  0x47   :  { %656 = vsyncadd [#allocation6], 4294966016 }
  0x48   :  { %657 = dma.done.wait [#allocation9], 1024  }
  0x49   :  { %658 = vsyncadd [#allocation9], 4294966272  ;;  %v667_v0 = vmov 0.0   ;;  %vm668_vm0 = vmmov 0   ;;  %v525_v1 = vld [vmem:[#allocation5] sm:$0xff]   ;;  %v526_v2 = vld [vmem:[#allocation5 + $0x8] sm:$0xff]   ;;  %v383_v44 = vlaneseq }
  0x4a   :  { %468 = vmatprep.subr.bf16.mxu0 %v667_v0  ;;  %472 = vmatprep.mubr.msk.bf16.mxu0 %vm668_vm0, %v667_v0  ;;  %v83_v3 = vld [vmem:[#allocation2] sm:$0xff]  ;;  %v527_v4 = vld [vmem:[#allocation7] sm:$0xff]   ;;  %vm108_vm1 = vcmask 261120   ;;  %v529_v7 = vld [vmem:[#allocation7 + $0x10] sm:$0xff]   ;;  %vm378_vm2 = vcmask 64512  }
  0x4b   :  { %476 = vmatprep.subr.bf16.mxu1 %v667_v0  ;;  %492 = vmatprep.mubr.msk.bf16.mxu1 %vm668_vm0, %v667_v0  ;;  %v84_v5 = vpack.c.bf16 %v83_v3, %v83_v3  ;;  %v528_v6 = vld [vmem:[#allocation7 + $0x8] sm:$0xff]   ;;  %v530_v8 = vld [vmem:[#allocation7 + $0x18] sm:$0xff]   ;;  %v531_v9 = vld [vmem:[#allocation7 + $0x20] sm:$0xff]   ;;  %v384_v45 = vand.u32 127, %v383_v44 }
  0x4c   :  { %469 = vmatpush3.bf16.msra.mxu0 %v525_v1  ;;  %477 = vmatpush3.bf16.msra.mxu1 %v527_v4  ;;  %v532_v10 = vld [vmem:[#allocation7 + $0x28] sm:$0xff]   ;;  %v533_v11 = vld [vmem:[#allocation7 + $0x30] sm:$0xff]   ;;  %v534_v12 = vld [vmem:[#allocation7 + $0x38] sm:$0xff]  }
  0x4d   :  { %470 = vmatprep.subr.bf16.mxu0 %v667_v0  ;;  %478 = vmatprep.subr.bf16.mxu1 %v667_v0  ;;  %v535_v13 = vld [vmem:[#allocation8] sm:$0xff]   ;;  %v536_v14 = vld [vmem:[#allocation8 + $0x8] sm:$0xff]   ;;  %v537_v15 = vld [vmem:[#allocation8 + $0x10] sm:$0xff]  }
  0x4e   :  { %v538_v16 = vld [vmem:[#allocation8 + $0x18] sm:$0xff]   ;;  %v539_v17 = vld [vmem:[#allocation8 + $0x20] sm:$0xff]   ;;  %v540_v18 = vld [vmem:[#allocation8 + $0x28] sm:$0xff]  }
  0x4f   :  { %v425_v19 = vld [vmem:[%s822_s2] ss:$0 sm:$0xff]  ;;  %v541_v27 = vld [vmem:[#allocation8 + $0x30] sm:$0xff]   ;;  %v542_v28 = vld [vmem:[#allocation8 + $0x38] sm:$0xff]  }
  0x50   :  { %471 = vmatpush3.bf16.msra.mxu0 %v526_v2  ;;  %479 = vmatpush3.bf16.msra.mxu1 %v528_v6  ;;  %v429_v29 = vld [vmem:[%s824_s4] ss:$0 sm:$0xff]  ;;  %s669_s4 = smov [#allocation10]  }
  0x51   :  { %496 = vmatprep.subr.bf16.mxu0 %v667_v0  ;;  %480 = vmatprep.subr.bf16.mxu1 %v667_v0  ;;  %v438_v37 = vld [vmem:[%s826_s6] ss:$0 sm:$0xff]  ;;  %s410_s6 = sshll.u32 %s669_s4, 4  ;;  %s411_s6 = int_to_ptr.vmem [resolvable:$true] %s410_s6 }
  0x52   :  { %s631_s11 = scalar_lea.vmem %s411_s6, 128  ;;  %p636_p5 = scmp.lt.s32.totalorder %s411_s6, %s411_s6 }
  0x53   :  { %473 = vmatmul.mubr.msk.bf16.vlgmr.msra.gmra.mrb[0].mxu0 %vm108_vm1, %v84_v5  ;;  %p632_p4 = scmp.ne.s32.totalorder %s411_s6, %s631_s11  ;;  %p637_p6 = scmp.lt.s32.totalorder %s631_s11, %s631_s11 }
  0x54   :  { %512 = vmatprep.mubr.msk.bf16.mxu0 %vm668_vm0, %v667_v0  ;;  %481 = vmatpush3.bf16.msra.mxu1 %v529_v7 }
  0x55   :  { %482 = vmatprep.subr.bf16.mxu1 %v667_v0  ;;  %497 = vmatpush3.bf16.msra.mxu0 %v535_v13  ;;  %p638_p7 = por %p637_p6, %p636_p5 }
  0x56   :  { %498 = vmatprep.subr.bf16.mxu0 %v667_v0 }
  0x57   :  { %p639_p8 = pnand %p638_p7, %p632_p4 }
  0x58   :  { %483 = vmatpush3.bf16.msra.mxu1 %v530_v8 }
  0x59   :  { %484 = vmatprep.subr.bf16.mxu1 %v667_v0  ;;  %499 = vmatpush3.bf16.msra.mxu0 %v536_v14 }
  0x5a   :  { %500 = vmatprep.subr.bf16.mxu0 %v667_v0 }
  0x5c   :  { %485 = vmatpush3.bf16.msra.mxu1 %v531_v9 }
  0x5d   :  { %486 = vmatprep.subr.bf16.mxu1 %v667_v0  ;;  %501 = vmatpush3.bf16.msra.mxu0 %v537_v15 }
  0x5e   :  { %502 = vmatprep.subr.bf16.mxu0 %v667_v0 }
  0x60   :  { %487 = vmatpush3.bf16.msra.mxu1 %v532_v10 }
  0x61   :  { %488 = vmatprep.subr.bf16.mxu1 %v667_v0  ;;  %503 = vmatpush3.bf16.msra.mxu0 %v538_v16 }
  0x62   :  { %504 = vmatprep.subr.bf16.mxu0 %v667_v0 }
  0x64   :  { %489 = vmatpush3.bf16.msra.mxu1 %v533_v11 }
  0x65   :  { %490 = vmatprep.subr.bf16.mxu1 %v667_v0  ;;  %505 = vmatpush3.bf16.msra.mxu0 %v539_v17 }
  0x66   :  { %506 = vmatprep.subr.bf16.mxu0 %v667_v0 }
  0x68   :  { %491 = vmatpush3.bf16.msra.mxu1 %v534_v12 }
  0x69   :  { %507 = vmatpush3.bf16.msra.mxu0 %v540_v18 }
  0x6a   :  { %508 = vmatprep.subr.bf16.mxu0 %v667_v0 }
  0x6d   :  { %509 = vmatpush3.bf16.msra.mxu0 %v541_v27 }
  0x6e   :  { %510 = vmatprep.subr.bf16.mxu0 %v667_v0 }
  0x71   :  { %511 = vmatpush3.bf16.msra.mxu0 %v542_v28 }
 0x126   :  { %v146_v20 = vpop.f32.mrb[0].mxu0 }
 0x127   :  { %v147_v21 = vadd.f32 %v425_v19, %v146_v20  ;;  %v474_v22 = vpop.f32.mrb[1].mxu0 }
 0x128   :  { %v149_v23 = vpop.f32.mrb[2].mxu0 }
 0x129   :  { %v152_v24 = vmax.f32 %v147_v21, 0.0  ;;  %v475_v25 = vpop.f32.mrb[3].mxu0 }
 0x12b   :  { %v153_v26 = vpack.c.bf16 %v152_v24, %v152_v24 }
 0x12d   :  { %493 = vmatmul.mubr.bf16.vlgmr.msra.gmra.mrb[0].mxu1 %v153_v26 }
 0x200   :  { %v259_v30 = vpop.f32.mrb[0].mxu1 }
 0x201   :  { %v260_v31 = vadd.f32 %v429_v29, %v259_v30  ;;  %v494_v32 = vpop.f32.mrb[1].mxu1 }
 0x202   :  { %v262_v33 = vpop.f32.mrb[2].mxu1 }
 0x203   :  { %v265_v34 = vmax.f32 %v260_v31, 0.0  ;;  %v495_v35 = vpop.f32.mrb[3].mxu1 }
 0x205   :  { %v266_v36 = vpack.c.bf16 %v265_v34, %v265_v34 }
 0x207   :  { %513 = vmatmul.mubr.bf16.vlgmr.msra.gmra.mrb[4].mxu0 %v266_v36 }
 0x2da   :  { %v372_v38 = vpop.f32.mrb[4].mxu0 }
 0x2db   :  { %v373_v39 = vadd.f32 %v438_v37, %v372_v38  ;;  %v514_v40 = vpop.f32.mrb[5].mxu0 }
 0x2dc   :  { %v375_v41 = vpop.f32.mrb[6].mxu0 }
 0x2dd   :  { %v515_v42 = vpop.f32.mrb[7].mxu0  ;;  %v380_v43 = vsel %vm378_vm2, %v373_v39, -inf  ;;  %379 = vst.msk [vmem:[#allocation10] sm:$0xff] %vm378_vm2, %v373_v39 }
 0x2de   :  { %381 = vmax.xlane.f32.xlu0 %v380_v43 }
 0x36b   :  { %v382_v46 = vpop.xlane.xlu0 %381 }
 0x36c   :  { %vm385_vm3 = vcmp.eq.f32.partialorder %v373_v39, %v382_v46 }
 0x36d   :  { %v386_v47 = vsel %vm385_vm3, %v384_v45, 8 }
 0x36e   :  { %v387_v48 = vsel %vm378_vm2, %v386_v47, 2147483647 }
 0x36f   :  { %v389_v49 = vshra.s32 %v387_v48, 16  ;;  %v388_v51 = vand.u32 65535, %v387_v48 }
 0x371   :  { %v391_v50 = vcvt.s32.f32 %v389_v49  ;;  %v390_v53 = vcvt.s32.f32 %v388_v51 }
 0x373   :  { %392 = vmin.xlane.f32.xlu0 %v391_v50 }
 0x400   :  { %v393_v52 = vpop.xlane.xlu0 %392 }
 0x401   :  { %vm394_vm4 = vcmp.eq.f32.partialorder %v391_v50, %v393_v52 }
 0x402   :  { %v395_v54 = vsel %vm394_vm4, %v390_v53, inf }
 0x403   :  { %396 = vmin.xlane.f32.xlu1 %v395_v54 }
 0x404   :  { %642 = shalt.err (!%p639_p8)
}
 0x405   :  { %s643_s14 = scalar_lea.hbm %s827_s7, 128 }
 0x406   :  { %p644_p9 = scmp.ne.s32.totalorder %s827_s7, %s643_s14  ;;  %p647_p10 = scmp.lt.u32.totalorder %s643_s14, %s827_s7 }
 0x408   :  { %p649_p11 = pnand %p647_p10, %p644_p9 }
 0x40a   :  { %652 = shalt.err (!%p649_p11)
}
 0x40b   :  { %413 = dma.vmem_to_hbm [thread:$0]  %s411_s6, 128, %s827_s7, [#allocation4]   ;;  %v399_v55 = vcvt.f32.s32 %v393_v52  ;;  %vm402_vm5 = vcmask 7168  }
 0x40d   :  { %v400_v57 = vshll.u32 %v399_v55, 16 }
 0x490   :  { %v397_v56 = vpop.xlane.xlu1 %396 }
 0x491   :  { %v398_v58 = vcvt.f32.s32 %v397_v56 }
 0x493   :  { %v401_v59 = vadd.s32 %v400_v57, %v398_v58 }
 0x495   :  { %403 = vst.msk [vmem:[%s828_s8] sm:$0xff] %vm402_vm5, %v401_v59 }
 0x496   :  { %659 = dma.done.wait [#allocation4], 128  }
 0x497   :  { %660 = vsyncadd [#allocation4], 4294967168 }
 0x498   :  { %421 = vsyncpa [#allocation3], 1 }
 0x499   :  { %422 = vsyncpa [#allocation6], 1 }
 0x49a   :  { %423 = vsyncpa [#allocation9], 1 }
 0x49b   :  { %424 = vsyncpa [#allocation4], 1 }

</bundles_post_ra>
